<compile_context>
chip_gen: v5e
topology: v5e:2x2
jax: 0.10.0
libtpu: 0.0.40
codegen_flags: <defaults>
</compile_context>

<pallas_src>
import functools

import jax
import jax.numpy as jnp
from jax import lax
from jax.experimental import pallas as pl
from jax.experimental.pallas import tpu as pltpu


def _flash_attn_kernel(q_ref, k_ref, v_ref, wt_ref, b_ref, *rest, has_mask):
    # q_ref: (1, tq, H)   k_ref/v_ref: (1, tk, H)   wt_ref: (H, H) = W^T
    # b_ref: (1, H)       [mask_ref: (1, tq, tk)]   o_ref: (1, tq, H)
    # scratch: qp_sc (tq, H), m_sc (tq, 1), l_sc (tq, 1), acc_sc (tq, H)
    if has_mask:
        mask_ref, o_ref, qp_sc, m_sc, l_sc, acc_sc = rest
    else:
        o_ref, qp_sc, m_sc, l_sc, acc_sc = rest

    ki = pl.program_id(2)

    @pl.when(ki == 0)
    def _init():
        # Linear projection once per (batch, q-tile): q @ W^T + b.
        qp = jnp.dot(q_ref[0], wt_ref[...], preferred_element_type=jnp.float32)
        qp = qp + b_ref[...].astype(jnp.float32)
        # TODO(synk): dropout is identity (inference); training dropout would
        # use pltpu.prng_seed / pltpu.stateful_bernoulli here.
        qp_sc[...] = qp.astype(qp_sc.dtype)
        m_sc[...] = jnp.full_like(m_sc, -jnp.inf)
        l_sc[...] = jnp.zeros_like(l_sc)
        acc_sc[...] = jnp.zeros_like(acc_sc)

    # Scores (tq, tk): contract the hidden dims directly (no k.T materialized).
    s = lax.dot_general(
        qp_sc[...], k_ref[0],
        dimension_numbers=(((1,), (1,)), ((), ())),
        preferred_element_type=jnp.float32,
    )
    if has_mask:
        s = s - 1000000.0 * (1.0 - mask_ref[0].astype(jnp.float32))

    # Online softmax update (f32).
    m_prev = m_sc[...]
    m_new = jnp.maximum(m_prev, jnp.max(s, axis=-1, keepdims=True))
    alpha = jnp.exp(m_prev - m_new)
    p = jnp.exp(s - m_new)
    l_sc[...] = alpha * l_sc[...] + jnp.sum(p, axis=-1, keepdims=True)
    acc_sc[...] = alpha * acc_sc[...] + jnp.dot(
        p.astype(v_ref.dtype), v_ref[0], preferred_element_type=jnp.float32)
    m_sc[...] = m_new

    @pl.when(ki == pl.num_programs(2) - 1)
    def _finalize():
        o_ref[0] = (acc_sc[...] * pl.reciprocal(l_sc[...], approx=True)
                    ).astype(o_ref.dtype)


def _pick_tile(s):
    """Largest TPU-friendly tile (<=256, lane/sublane aligned) dividing s."""
    for t in (256, 128):
        if s % t == 0:
            return t
    return s  # small / irregular S: use the full extent (valid full-dim block)


def attention_pallas(q, k, v, weight, bias, attention_mask=None):
    """q, k, v: [B, S, H]; weight: [H, H] (torch Linear layout); bias: [H]."""
    B, S, H = q.shape
    tq = _pick_tile(S)
    tk = _pick_tile(S)
    grid = (B, S // tq, S // tk)

    weight_t = weight.T            # wrapper-side transpose: Linear is x @ W^T
    bias2d = bias.reshape(1, H)
    has_mask = attention_mask is not None

    in_specs = [
        pl.BlockSpec((1, tq, H), lambda b, qi, ki: (b, qi, 0)),   # q
        pl.BlockSpec((1, tk, H), lambda b, qi, ki: (b, ki, 0)),   # k
        pl.BlockSpec((1, tk, H), lambda b, qi, ki: (b, ki, 0)),   # v
        pl.BlockSpec((H, H), lambda b, qi, ki: (0, 0)),           # W^T
        pl.BlockSpec((1, H), lambda b, qi, ki: (0, 0)),           # bias
    ]
    args = [q, k, v, weight_t, bias2d]
    if has_mask:
        in_specs.append(
            pl.BlockSpec((1, tq, tk), lambda b, qi, ki: (b, qi, ki)))
        args.append(attention_mask)

    grid_spec = pltpu.PrefetchScalarGridSpec(
        num_scalar_prefetch=0,
        grid=grid,
        in_specs=in_specs,
        out_specs=pl.BlockSpec((1, tq, H), lambda b, qi, ki: (b, qi, 0)),
        scratch_shapes=[
            pltpu.VMEM((tq, H), q.dtype),      # projected q tile (native dtype)
            pltpu.VMEM((tq, 1), jnp.float32),  # running max
            pltpu.VMEM((tq, 1), jnp.float32),  # running sum
            pltpu.VMEM((tq, H), jnp.float32),  # output accumulator
        ],
    )

    kernel = functools.partial(_flash_attn_kernel, has_mask=has_mask)

    return pl.pallas_call(
        kernel,
        out_shape=jax.ShapeDtypeStruct((B, S, H), q.dtype),
        grid_spec=grid_spec,
        compiler_params=pltpu.CompilerParams(
            dimension_semantics=("parallel", "parallel", "arbitrary")),
    )(*args)


def attention_ref(q, k, v, weight, bias, attention_mask=None):
    """Pure-JAX reference mirroring the PyTorch forward."""
    qp = q @ weight.T + bias
    a = jnp.einsum("bqh,bkh->bqk", qp, k)
    if attention_mask is not None:
        a = a - 1000000.0 * (1.0 - attention_mask)
    a = jax.nn.softmax(a, axis=-1)
    return jnp.einsum("bqk,bkh->bqh", a, v)


if __name__ == "__main__":
    B, S, H = 2, 8, 32
    key = jax.random.PRNGKey(0)
    kq, kk, kv, kw, kb, km = jax.random.split(key, 6)

    q = jax.random.normal(kq, (B, S, H), dtype=jnp.float32)
    k = jax.random.normal(kk, (B, S, H), dtype=jnp.float32)
    v = jax.random.normal(kv, (B, S, H), dtype=jnp.float32)

    # Deterministic Linear parameters (same shapes as torch.nn.Linear(H, H)).
    bound = 1.0 / (H ** 0.5)
    weight = jax.random.uniform(kw, (H, H), minval=-bound, maxval=bound,
                                dtype=jnp.float32)
    bias = jax.random.uniform(kb, (H,), minval=-bound, maxval=bound,
                              dtype=jnp.float32)

    # Random 0/1 attention mask [B, S, S].
    mask = (jax.random.uniform(km, (B, S, S)) > 0.2).astype(jnp.float32)

    # Masked path.
    out = attention_pallas(q, k, v, weight, bias, mask)
    out = jax.block_until_ready(out)
    ref = attention_ref(q, k, v, weight, bias, mask)
    assert jnp.allclose(out, ref, atol=1e-2, rtol=1e-2), (
        f"masked mismatch: max abs err {jnp.max(jnp.abs(out - ref))}"
    )

    # No-mask path (separate compiled variant; no dense ones mask is built).
    out_nm = attention_pallas(q, k, v, weight, bias, None)
    out_nm = jax.block_until_ready(out_nm)
    ref_nm = attention_ref(q, k, v, weight, bias, None)
    assert jnp.allclose(out_nm, ref_nm, atol=1e-2, rtol=1e-2), (
        f"no-mask mismatch: max abs err {jnp.max(jnp.abs(out_nm - ref_nm))}"
    )

    print("KERNEL_OK")
</pallas_src>

<mosaic_0001>
module attributes {stable_mosaic.version = 11 : i64} {
  func.func @_flash_attn_kernel(%arg0: i32, %arg1: i32, %arg2: i32, %arg3: memref<1x8x32xf32, #tpu.memory_space<vmem>>, %arg4: memref<1x8x32xf32, #tpu.memory_space<vmem>>, %arg5: memref<1x8x32xf32, #tpu.memory_space<vmem>>, %arg6: memref<32x32xf32, #tpu.memory_space<vmem>>, %arg7: memref<1x32xf32, #tpu.memory_space<vmem>>, %arg8: memref<1x8x8xf32, #tpu.memory_space<vmem>>, %arg9: memref<1x8x32xf32, #tpu.memory_space<vmem>>, %arg10: memref<8x32xf32, #tpu.memory_space<vmem>>, %arg11: memref<8x1xf32, #tpu.memory_space<vmem>>, %arg12: memref<8x1xf32, #tpu.memory_space<vmem>>, %arg13: memref<8x32xf32, #tpu.memory_space<vmem>>) attributes {dimension_semantics = [#tpu.dimension_semantics<parallel>, #tpu.dimension_semantics<parallel>, #tpu.dimension_semantics<arbitrary>], iteration_bounds = array<i64: 2, 1, 1>, scalar_prefetch = 0 : i64, scratch_operands = 4 : i64, tpu.core_type = #tpu.core_type<tc>, window_params = [{transform_indices = @transform_0, window_bounds = array<i64: 1, 8, 32>}, {transform_indices = @transform_1, window_bounds = array<i64: 1, 8, 32>}, {transform_indices = @transform_2, window_bounds = array<i64: 1, 8, 32>}, {pipeline_mode = #tpu.pipeline_mode<synchronous>, transform_indices = @transform_3, window_bounds = array<i64: 32, 32>}, {pipeline_mode = #tpu.pipeline_mode<synchronous>, transform_indices = @transform_4, window_bounds = array<i64: 1, 32>}, {transform_indices = @transform_5, window_bounds = array<i64: 1, 8, 8>}, {transform_indices = @transform_6, window_bounds = array<i64: 1, 8, 32>}]} {
    %c0_i32 = arith.constant 0 : i32
    %0 = arith.cmpi eq, %arg2, %c0_i32 : i32
    %1 = arith.extui %0 : i1 to i32
    %c0_i32_0 = arith.constant 0 : i32
    %2 = arith.cmpi ne, %1, %c0_i32_0 : i32
    scf.if %2 {
      %c0_30 = arith.constant 0 : index
      %c0_31 = arith.constant 0 : index
      %c0_32 = arith.constant 0 : index
      %41 = vector.load %arg3[%c0_30, %c0_31, %c0_32] : memref<1x8x32xf32, #tpu.memory_space<vmem>>, vector<1x8x32xf32>
      %42 = vector.shape_cast %41 : vector<1x8x32xf32> to vector<8x32xf32>
      %c0_33 = arith.constant 0 : index
      %c0_34 = arith.constant 0 : index
      %43 = vector.load %arg6[%c0_33, %c0_34] : memref<32x32xf32, #tpu.memory_space<vmem>>, vector<32x32xf32>
      %cst_35 = arith.constant dense<0.000000e+00> : vector<8x32xf32>
      %44 = tpu.matmul %42, %43, %cst_35 {dimension_numbers = #tpu.dot_dimension_numbers<[1], [0], [0], [1], [0, 0, 1, 1], [], []>} : vector<8x32xf32>, vector<32x32xf32>, vector<8x32xf32> -> vector<8x32xf32>
      %c0_36 = arith.constant 0 : index
      %c0_37 = arith.constant 0 : index
      %45 = vector.load %arg7[%c0_36, %c0_37] : memref<1x32xf32, #tpu.memory_space<vmem>>, vector<1x32xf32>
      %46 = vector.broadcast %45 : vector<1x32xf32> to vector<8x32xf32>
      %47 = arith.addf %44, %46 : vector<8x32xf32>
      %c0_38 = arith.constant 0 : index
      %c0_39 = arith.constant 0 : index
      %48 = vector.load %arg10[%c0_38, %c0_39] : memref<8x32xf32, #tpu.memory_space<vmem>>, vector<8x32xf32>
      tpu.vector_store %arg10[%c0_38, %c0_39], %47 {strides = array<i32>} : memref<8x32xf32, #tpu.memory_space<vmem>>, vector<8x32xf32>,
      %cst_40 = arith.constant 0xFF800000 : f32
      %49 = vector.broadcast %cst_40 : f32 to vector<8x1xf32>
      %c0_41 = arith.constant 0 : index
      %c0_42 = arith.constant 0 : index
      %50 = vector.load %arg11[%c0_41, %c0_42] : memref<8x1xf32, #tpu.memory_space<vmem>>, vector<8x1xf32>
      tpu.vector_store %arg11[%c0_41, %c0_42], %49 {strides = array<i32>} : memref<8x1xf32, #tpu.memory_space<vmem>>, vector<8x1xf32>,
      %cst_43 = arith.constant 0.000000e+00 : f32
      %51 = vector.broadcast %cst_43 : f32 to vector<8x1xf32>
      %c0_44 = arith.constant 0 : index
      %c0_45 = arith.constant 0 : index
      %52 = vector.load %arg12[%c0_44, %c0_45] : memref<8x1xf32, #tpu.memory_space<vmem>>, vector<8x1xf32>
      tpu.vector_store %arg12[%c0_44, %c0_45], %51 {strides = array<i32>} : memref<8x1xf32, #tpu.memory_space<vmem>>, vector<8x1xf32>,
      %cst_46 = arith.constant 0.000000e+00 : f32
      %53 = vector.broadcast %cst_46 : f32 to vector<8x32xf32>
      %c0_47 = arith.constant 0 : index
      %c0_48 = arith.constant 0 : index
      %54 = vector.load %arg13[%c0_47, %c0_48] : memref<8x32xf32, #tpu.memory_space<vmem>>, vector<8x32xf32>
      tpu.vector_store %arg13[%c0_47, %c0_48], %53 {strides = array<i32>} : memref<8x32xf32, #tpu.memory_space<vmem>>, vector<8x32xf32>,
    } else {
    }
    %c0 = arith.constant 0 : index
    %c0_1 = arith.constant 0 : index
    %3 = vector.load %arg10[%c0, %c0_1] : memref<8x32xf32, #tpu.memory_space<vmem>>, vector<8x32xf32>
    %c0_2 = arith.constant 0 : index
    %c0_3 = arith.constant 0 : index
    %c0_4 = arith.constant 0 : index
    %4 = vector.load %arg4[%c0_2, %c0_3, %c0_4] : memref<1x8x32xf32, #tpu.memory_space<vmem>>, vector<1x8x32xf32>
    %5 = vector.shape_cast %4 : vector<1x8x32xf32> to vector<8x32xf32>
    %cst = arith.constant dense<0.000000e+00> : vector<8x8xf32>
    %6 = tpu.matmul %3, %5, %cst {dimension_numbers = #tpu.dot_dimension_numbers<[1], [1], [0], [0], [0, 0, 1, 0], [], []>} : vector<8x32xf32>, vector<8x32xf32>, vector<8x8xf32> -> vector<8x8xf32>
    %c0_5 = arith.constant 0 : index
    %c0_6 = arith.constant 0 : index
    %c0_7 = arith.constant 0 : index
    %7 = vector.load %arg8[%c0_5, %c0_6, %c0_7] : memref<1x8x8xf32, #tpu.memory_space<vmem>>, vector<1x8x8xf32>
    %8 = vector.shape_cast %7 : vector<1x8x8xf32> to vector<8x8xf32>
    %cst_8 = arith.constant 1.000000e+00 : f32
    %9 = vector.broadcast %cst_8 : f32 to vector<8x8xf32>
    %10 = arith.subf %9, %8 : vector<8x8xf32>
    %cst_9 = arith.constant 1.000000e+06 : f32
    %11 = vector.broadcast %cst_9 : f32 to vector<8x8xf32>
    %12 = arith.mulf %11, %10 : vector<8x8xf32>
    %13 = arith.subf %6, %12 : vector<8x8xf32>
    %c0_10 = arith.constant 0 : index
    %c0_11 = arith.constant 0 : index
    %14 = vector.load %arg11[%c0_10, %c0_11] : memref<8x1xf32, #tpu.memory_space<vmem>>, vector<8x1xf32>
    %cst_12 = arith.constant dense<0xFF800000> : vector<8xf32>
    %15 = vector.multi_reduction <maximumf>, %13, %cst_12 [1] : vector<8x8xf32> to vector<8xf32>
    %16 = vector.shape_cast %15 : vector<8xf32> to vector<8x1xf32>
    %17 = arith.maximumf %14, %16 : vector<8x1xf32>
    %18 = arith.subf %14, %17 : vector<8x1xf32>
    %19 = math.exp %18 : vector<8x1xf32>
    %20 = vector.broadcast %17 : vector<8x1xf32> to vector<8x8xf32>
    %21 = arith.subf %13, %20 : vector<8x8xf32>
    %22 = math.exp %21 : vector<8x8xf32>
    %c0_13 = arith.constant 0 : index
    %c0_14 = arith.constant 0 : index
    %23 = vector.load %arg12[%c0_13, %c0_14] : memref<8x1xf32, #tpu.memory_space<vmem>>, vector<8x1xf32>
    %24 = arith.mulf %19, %23 : vector<8x1xf32>
    %cst_15 = arith.constant dense<0.000000e+00> : vector<8xf32>
    %25 = vector.multi_reduction <add>, %22, %cst_15 [1] : vector<8x8xf32> to vector<8xf32>
    %26 = vector.shape_cast %25 : vector<8xf32> to vector<8x1xf32>
    %27 = arith.addf %24, %26 : vector<8x1xf32>
    %c0_16 = arith.constant 0 : index
    %c0_17 = arith.constant 0 : index
    %28 = vector.load %arg12[%c0_16, %c0_17] : memref<8x1xf32, #tpu.memory_space<vmem>>, vector<8x1xf32>
    tpu.vector_store %arg12[%c0_16, %c0_17], %27 {strides = array<i32>} : memref<8x1xf32, #tpu.memory_space<vmem>>, vector<8x1xf32>,
    %c0_18 = arith.constant 0 : index
    %c0_19 = arith.constant 0 : index
    %29 = vector.load %arg13[%c0_18, %c0_19] : memref<8x32xf32, #tpu.memory_space<vmem>>, vector<8x32xf32>
    %30 = vector.broadcast %19 : vector<8x1xf32> to vector<8x32xf32>
    %31 = arith.mulf %30, %29 : vector<8x32xf32>
    %c0_20 = arith.constant 0 : index
    %c0_21 = arith.constant 0 : index
    %c0_22 = arith.constant 0 : index
    %32 = vector.load %arg5[%c0_20, %c0_21, %c0_22] : memref<1x8x32xf32, #tpu.memory_space<vmem>>, vector<1x8x32xf32>
    %33 = vector.shape_cast %32 : vector<1x8x32xf32> to vector<8x32xf32>
    %cst_23 = arith.constant dense<0.000000e+00> : vector<8x32xf32>
    %34 = tpu.matmul %22, %33, %cst_23 {dimension_numbers = #tpu.dot_dimension_numbers<[1], [0], [0], [1], [0, 0, 1, 1], [], []>} : vector<8x8xf32>, vector<8x32xf32>, vector<8x32xf32> -> vector<8x32xf32>
    %35 = arith.addf %31, %34 : vector<8x32xf32>
    %c0_24 = arith.constant 0 : index
    %c0_25 = arith.constant 0 : index
    %36 = vector.load %arg13[%c0_24, %c0_25] : memref<8x32xf32, #tpu.memory_space<vmem>>, vector<8x32xf32>
    tpu.vector_store %arg13[%c0_24, %c0_25], %35 {strides = array<i32>} : memref<8x32xf32, #tpu.memory_space<vmem>>, vector<8x32xf32>,
    %c0_26 = arith.constant 0 : index
    %c0_27 = arith.constant 0 : index
    %37 = vector.load %arg11[%c0_26, %c0_27] : memref<8x1xf32, #tpu.memory_space<vmem>>, vector<8x1xf32>
    tpu.vector_store %arg11[%c0_26, %c0_27], %17 {strides = array<i32>} : memref<8x1xf32, #tpu.memory_space<vmem>>, vector<8x1xf32>,
    %c0_i32_28 = arith.constant 0 : i32
    %38 = arith.cmpi eq, %arg2, %c0_i32_28 : i32
    %39 = arith.extui %38 : i1 to i32
    %c0_i32_29 = arith.constant 0 : i32
    %40 = arith.cmpi ne, %39, %c0_i32_29 : i32
    scf.if %40 {
      %c0_30 = arith.constant 0 : index
      %c0_31 = arith.constant 0 : index
      %41 = vector.load %arg13[%c0_30, %c0_31] : memref<8x32xf32, #tpu.memory_space<vmem>>, vector<8x32xf32>
      %c0_32 = arith.constant 0 : index
      %c0_33 = arith.constant 0 : index
      %42 = vector.load %arg12[%c0_32, %c0_33] : memref<8x1xf32, #tpu.memory_space<vmem>>, vector<8x1xf32>
      %43 = tpu.reciprocal %42 {approx = true} : vector<8x1xf32> -> vector<8x1xf32>
      %44 = vector.broadcast %43 : vector<8x1xf32> to vector<8x32xf32>
      %45 = arith.mulf %41, %44 : vector<8x32xf32>
      %c0_34 = arith.constant 0 : index
      %c0_35 = arith.constant 0 : index
      %c0_36 = arith.constant 0 : index
      %46 = vector.load %arg9[%c0_34, %c0_35, %c0_36] : memref<1x8x32xf32, #tpu.memory_space<vmem>>, vector<1x8x32xf32>
      %47 = vector.shape_cast %46 : vector<1x8x32xf32> to vector<8x32xf32>
      %48 = vector.shape_cast %45 : vector<8x32xf32> to vector<1x8x32xf32>
      tpu.vector_store %arg9[%c0_34, %c0_35, %c0_36], %48 {strides = array<i32>} : memref<1x8x32xf32, #tpu.memory_space<vmem>>, vector<1x8x32xf32>,
    } else {
    }
    return
  }
  func.func @transform_0(%arg0: i32, %arg1: i32, %arg2: i32) -> (i32, i32, i32) {
    %c0_i32 = arith.constant 0 : i32
    %c0_i32_0 = arith.constant 0 : i32
    return %arg0, %arg1, %c0_i32 : i32, i32, i32
  }
  func.func @transform_1(%arg0: i32, %arg1: i32, %arg2: i32) -> (i32, i32, i32) {
    %c0_i32 = arith.constant 0 : i32
    %c0_i32_0 = arith.constant 0 : i32
    return %arg0, %arg2, %c0_i32 : i32, i32, i32
  }
  func.func @transform_2(%arg0: i32, %arg1: i32, %arg2: i32) -> (i32, i32, i32) {
    %c0_i32 = arith.constant 0 : i32
    %c0_i32_0 = arith.constant 0 : i32
    return %arg0, %arg2, %c0_i32 : i32, i32, i32
  }
  func.func @transform_3(%arg0: i32, %arg1: i32, %arg2: i32) -> (i32, i32) {
    %c0_i32 = arith.constant 0 : i32
    %c0_i32_0 = arith.constant 0 : i32
    %c0_i32_1 = arith.constant 0 : i32
    return %c0_i32, %c0_i32_0 : i32, i32
  }
  func.func @transform_4(%arg0: i32, %arg1: i32, %arg2: i32) -> (i32, i32) {
    %c0_i32 = arith.constant 0 : i32
    %c0_i32_0 = arith.constant 0 : i32
    %c0_i32_1 = arith.constant 0 : i32
    return %c0_i32, %c0_i32_0 : i32, i32
  }
  func.func @transform_5(%arg0: i32, %arg1: i32, %arg2: i32) -> (i32, i32, i32) {
    %c0_i32 = arith.constant 0 : i32
    return %arg0, %arg1, %arg2 : i32, i32, i32
  }
  func.func @transform_6(%arg0: i32, %arg1: i32, %arg2: i32) -> (i32, i32, i32) {
    %c0_i32 = arith.constant 0 : i32
    %c0_i32_0 = arith.constant 0 : i32
    return %arg0, %arg1, %c0_i32 : i32, i32, i32
  }
}

</mosaic_0001>

<bundles_post_ra>
// kernel: tpu_custom_call.1
= control target key start
LH: loop header
LB: loop body
LE: loop exit
PB: predicated region body
PF: predicated region fallthrough
CT: control target
= control target key end

     0   :  { %s1402_s0 = inlined_call_operand.hbm [shape: f32[2,8,32], index: 0, kind: input, shape index: {}]   ;;  %s1403_s1 = inlined_call_operand.hbm [shape: f32[2,8,32], index: 1, kind: input, shape index: {}]   ;;  %s1404_s2 = inlined_call_operand.hbm [shape: f32[2,8,32], index: 2, kind: input, shape index: {}]   ;;  %s1405_s3 = inlined_call_operand.hbm [shape: f32[32,32], index: 3, kind: input, shape index: {}]   ;;  %s1406_s4 = inlined_call_operand.vmem [shape: f32[1,32], index: 4, kind: input, shape index: {}]   ;;  %s1407_s5 = inlined_call_operand.hbm [shape: f32[2,8,8], index: 5, kind: input, shape index: {}]   ;;  %s1408_s6 = inlined_call_operand.hbm [shape: f32[2,8,32], index: 6, kind: output, shape index: {}]  }
   0x1   :  { %1415 = sst [smem:[#allocation27_spill]] %s1402_s0 }
   0x2   :  { %1416 = sst [smem:[#allocation28_spill]] %s1403_s1 }
   0x3   :  { %1417 = sst [smem:[#allocation29_spill]] %s1405_s3 }
   0x4   :  { %11 = vsyncpa [#allocation7], 0 }
   0x5   :  { %13 = vsyncpa [#allocation7 + $0x1], 0 }
   0x6   :  { %14 = vsyncpa [#allocation10], 0 }
   0x7   :  { %16 = vsyncpa [#allocation10 + $0x1], 0 }
   0x8   :  { %17 = vsyncpa [#allocation13], 0 }
   0x9   :  { %18 = vsyncpa [#allocation8], 0 }
   0xa   :  { %20 = vsyncpa [#allocation8 + $0x1], 0  ;;  %s1175_s21 = smov 0   ;;  %s1177_s22 = smov 0  }
   0xb   :  { %s1179_s23 = smov 0   ;;  %s1181_s24 = smov 0  }
   0xc   :  { %s1183_s25 = smov 0   ;;  %s1185_s26 = smov 0  }
   0xd LB: > { %1418 = sst [smem:[#allocation21_spill]] %s1120_s23  ;;  %s45_s27 = sadd.s32 1, %s1128_s25  ;;  %s1132_s26 = sphi %s1185_s26, %s26_s26   ;;  %s1128_s25 = sphi %s1183_s25, %s1438_s25   ;;  %s1124_s24 = sphi %s1181_s24, %s1437_s24   ;;  %s1120_s23 = sphi %s1179_s23, %s1436_s23   ;;  %s1116_s22 = sphi %s1177_s22, %s1440_s22   ;;  %s1112_s21 = sphi %s1175_s21, %s1439_s21  }
   0xe   : > { %1419 = sst [smem:[#allocation22_spill]] %s1128_s25  ;;  %s54_s28 = sadd.s32 1, %s1120_s23 }
   0xf   : > { %1420 = sst [smem:[#allocation23_spill]] %s1132_s26  ;;  %p47_p0 = scmp.ge.s32.totalorder %s45_s27, 2 }
  0x10   : > { %p61_p1 = scmp.ne.s32.totalorder %s1120_s23, %s1116_s22  ;;  %p62_p2 = scmp.eq.s32.totalorder %s1132_s26, 0 }
  0x11   : > { %p761_p3 = scmp.ge.s32.totalorder %s1132_s26, 2  ;;  %s1442_s27 = smov (%p47_p0, %s45_s27), 0 }
  0x12   : > { %1421 = sst [smem:[#allocation24_spill]] %s1442_s27  ;;  %p1216_p4 = por %p62_p2, %p61_p1 }
  0x13   : > { %p821_p5 = scmp.lt.s32.totalorder %s1132_s26, 2  ;;  %s49_s30 = ssub.s32 %s1128_s25, %s1442_s27 }
  0x14   : > { %s264_s7 = sand.u32 1, %s1132_s26   ;;  %p52_p6 = scmp.eq.s32.totalorder %s49_s30, 0 }
  0x15   : > { %s266_s8 = sand.u32 1, %s1120_s23   ;;  %s1226_s9 = sshll.u32 %s1128_s25, 3 }
  0x16   : > { %s1229_s10 = scalar_select %p52_p6, %s1120_s23, %s54_s28  }
  0x17   : > { %s1231_s11 = sshll.u32 %s266_s8, 3  ;;  %s1424_s0 = sld [smem:[#allocation27_spill]] }
  0x18   : > { %1423 = sst [smem:[#allocation25_spill]] %s1229_s10  ;;  %s268_s16 = scalar_lea.vmem [#allocation6], %s1231_s11 }
  0x19   : > { %s277_s17 = sshll.u32 %s268_s16, 4  ;;  %p1242_p7 = pnand %p821_p5, %p1216_p4  ;;  %s278_s17 = int_to_ptr.vmem [resolvable:$true] %s277_s17 }
  0x1a   : > { %s1426_s1 = sld [smem:[#allocation28_spill]]  ;;  %s1250_s30 = scalar_lea.sflag [#allocation7], %s264_s7 }
  0x1b   : > { %s288_s8 = scalar_lea.vmem [#allocation9], %s1231_s11  ;;  %s1256_s13 = scalar_lea.sflag [#allocation10], %s264_s7 }
  0x1c   : > { %s297_s12 = sshll.u32 %s288_s8, 4  ;;  %s758_s16 = sadd.s32 4294967294, %s1132_s26   ;;  %s298_s12 = int_to_ptr.vmem [resolvable:$true] %s297_s12 }
  0x1d   : > { %s273_s14 = scalar_lea.hbm %s1424_s0, %s1226_s9  ;;  %p67_p8 = scmp.ne.s32.totalorder %s1116_s22, %s1112_s21 }
  0x1e   : > { %s275_s15 = sshll.u32 %s273_s14, 4  ;;  %s1262_s14 = sadd.s32 4294967295, %s1132_s26   ;;  %s276_s15 = int_to_ptr.hbm [resolvable:$true] %s275_s15 }
  0x1f   : > { %806 = dma.hbm_to_vmem [thread:$0]  (!%p1242_p7), %s276_s15, 128, %s278_s17, %s1250_s30  }
  0x20   : > { %s293_s28 = scalar_lea.hbm %s1426_s1, %s1226_s9  ;;  %p68_p9 = scmp.eq.s32.totalorder %s1262_s14, 0 }
  0x21   : > { %s295_s29 = sshll.u32 %s293_s28, 4  ;;  %p221_p10 = scmp.eq.s32.totalorder %s1262_s14, 1  ;;  %s296_s29 = int_to_ptr.hbm [resolvable:$true] %s295_s29 }
  0x22   : > { %809 = dma.hbm_to_vmem [thread:$0]  (!%p1242_p7), %s296_s29, 128, %s298_s12, %s1256_s13  }
  0x23   : > { %p227_p11 = scmp.eq.s32.totalorder %s758_s16, 1  ;;  %p1271_p12 = por %p68_p9, %p67_p8 }
  0x24   : > { %p759_p13 = scmp.ge.s32.totalorder %s1132_s26, 1  ;;  %p1279_p0 = por %p221_p10, %p61_p1 }
  0x25   : > { %p1283_p2 = por %p227_p11, %p67_p8  ;;  %p234_p4 = scmp.lt.s32.totalorder %s1132_s26, 3 }
  0x26   : > { %s1431_s3 = sld [smem:[#allocation29_spill]]  ;;  %s1134_s8 = smov [#allocation12]  }
  0x27   : > { %s1429_s17 = scalar_select %p1283_p2, 1, 0 }
  0x28   : > { %p1291_p5 = pnand %p759_p13, %p234_p4  ;;  %s247_s12 = sshll.u32 %s1134_s8, 4  ;;  %s248_s12 = int_to_ptr.vmem [resolvable:$true] %s247_s12 }
  0x29   : > { %1430 = sst [smem:[#allocation26_spill]] %s1429_s17  ;;  %s313_s20 = scalar_lea.hbm %s1404_s2, %s1226_s9 }
  0x2a   : > { %p799_p1 = pneg %p1291_p5  ;;  %s315_s0 = sshll.u32 %s313_s20, 4  ;;  %s316_s0 = int_to_ptr.hbm [resolvable:$true] %s315_s0 }
  0x2b   : > { %s308_s1 = scalar_lea.vmem [#allocation11], %s1231_s11  ;;  %s1135_s27 = smov 128  }
  0x2c   : > { %s245_s28 = sshll.u32 %s1431_s3, 4  ;;  %p800_p6 = pnand %p799_p1, %p68_p9  ;;  %s246_s28 = int_to_ptr.hbm [resolvable:$true] %s245_s28 }
  0x2d   : > { %s317_s3 = sshll.u32 %s308_s1, 4  ;;  %s1136_s25 = smov 8   ;;  %s318_s3 = int_to_ptr.vmem [resolvable:$true] %s317_s3 }
  0x2e   : > { %802 = dma.hbm_to_vmem [thread:$0]  (!%p800_p6), %s246_s28, 512, %s248_s12, [#allocation13], %s1135_s27, %s1135_s27, %s1136_s25  }
  0x2f   : > { %812 = dma.hbm_to_vmem [thread:$0]  (!%p1242_p7), %s316_s0, 128, %s318_s3, %s1256_s13  }
  0x30   : > { %s334_s23 = scalar_lea.hbm %s1407_s5, %s1226_s9  ;;  %s328_s26 = scalar_lea.vmem [#allocation14], %s1231_s11 }
  0x31   : > { %s338_s17 = sshll.u32 %s328_s26, 4  ;;  %s336_s16 = sshll.u32 %s334_s23, 4  ;;  %s339_s17 = int_to_ptr.vmem [resolvable:$true] %s338_s17  ;;  %s337_s16 = int_to_ptr.hbm [resolvable:$true] %s336_s16 }
  0x32   : > { %815 = dma.hbm_to_vmem [thread:$0]  (!%p1242_p7), %s337_s16, 128, %s339_s17, %s1250_s30  }
  0x33   : > { %347 = sbr.rel (%p1291_p5) target bundleno = 810 (0x32a), region = 44  ;;  %s349_s1 = sand.u32 (!%p1291_p5), 1, %s1262_s14  }
  0x34   : > { %s351_s0 = sand.u32 (!%p1291_p5), 1, %s1116_s22   ;;  %s350_s25 = scalar_lea.sflag (!%p1291_p5), [#allocation7], %s349_s1 }
  0x35   : > { %s1321_s3 = sshll.u32 (!%p1291_p5), %s351_s0, 3 }
  0x36   : > { %s353_s26 = scalar_lea.vmem (!%p1291_p5), [#allocation6], %s1321_s3 }
  0x38   : > { %1091 = dma.done.wait (%p1271_p12), %s350_s25, 128  }
  0x39   : > { %1093 = vsyncadd (%p1271_p12), %s350_s25, 4294967168  ;;  %s360_s23 = scalar_lea.sflag [#allocation10], %s349_s1  ;;  %s363_s27 = scalar_lea.vmem [#allocation9], %s1321_s3 }
  0x3a   : > { %1095 = dma.done.wait (%p1271_p12), %s360_s23, 256  }
  0x3b   : > { %1097 = vsyncadd (%p1271_p12), %s360_s23, 4294967040  ;;  %s373_s9 = scalar_lea.vmem [#allocation11], %s1321_s3 }
  0x3c   : > { %1099 = dma.done.wait (%p68_p9), [#allocation13], 512  }
  0x3d   : > { %1101 = vsyncadd (%p68_p9), [#allocation13], 4294966784  ;;  %s388_s10 = scalar_lea.vmem [#allocation14], %s1321_s3 }
  0x3e   : > { %1103 = dma.done.wait (%p1271_p12), %s350_s25, 128  }
  0x3f   : > { %1105 = vsyncadd (%p1271_p12), %s350_s25, 4294967168  ;;  %v441_v0 = vld [vmem:[#allocation12 + $0x18] sm:$0xff]  ;;  %v440_v1 = vld [vmem:[#allocation12 + $0x10] sm:$0xff]  ;;  %vm446_vm0 = vcmask 261120   ;;  %vm471_vm1 = vcmask 7168   ;;  %v1137_v10 = vmov -inf  }
  0x40   : > { %462 = vmatpush.msra.mxu0 %v441_v0  ;;  %v439_v2 = vld [vmem:[#allocation12 + $0x8] sm:$0xff]  ;;  %v438_v3 = vld [vmem:[#allocation12] sm:$0xff]  ;;  %v437_v4 = vld [vmem:[%s353_s26] sm:$0xff]  ;;  %472 = vst.msk [vmem:[#allocation3] sm:$0xff] %vm471_vm1, %v1137_v10  ;;  %vm509_vm2 = vcmask 64512   ;;  %v1138_v17 = vmov 0  }
  0x41   : > { %v476_v5 = vld [vmem:[%s363_s27] sm:$0xff]  ;;  %v881_v6 = vld [vmem:[%s1406_s4] ss:$0 sm:$0xff]  ;;  %878 = vset.pattern.permute.xlu0 %v1138_v17  ;;  %879 = vset.pattern.permute.xlu1 %v1138_v17  ;;  %v1139_v18 = vmov 0.0   ;;  %s782_s30 = sshll.u32 %s1124_s24, 3  ;;  %s432_s17 = scalar_lea.vmem [#allocation15], %s1321_s3 }
  0x42   : > { %463 = vmatpush.msra.mxu0 %v440_v1  ;;  %778 = vmatpush.xpose.msk.msra.mxu1 %vm446_vm0, %v476_v5  ;;  %v504_v11 = vld [vmem:[%s388_s10] sm:$0xff]  ;;  %473 = vst.msk [vmem:[#allocation4] sm:$0xff] %vm471_vm1, %v1139_v18  ;;  %v540_v23 = vld [vmem:[%s373_s9] sm:$0xff]  ;;  %s592_s7 = scalar_lea.hbm %s1408_s6, %s782_s30  ;;  %s594_s28 = sshll.u32 %s432_s17, 4  ;;  %s595_s28 = int_to_ptr.vmem [resolvable:$true] %s594_s28 }
  0x43   : > { %v505_v12 = vsub.f32 1.0, %v504_v11  ;;  %880 = vset.pattern.permute.xlu2 %v1138_v17  ;;  %474 = vst.msk [vmem:[#allocation5] sm:$0xff] %vm446_vm0, %v1139_v18  ;;  %559 = vmatpush.msra.mxu2 %v540_v23  ;;  %s596_s29 = sshll.u32 %s592_s7, 4  ;;  %s581_s12 = scalar_lea.sflag [#allocation8], %s351_s0  ;;  %s597_s29 = int_to_ptr.hbm [resolvable:$true] %s596_s29 }
  0x44   : > { %464 = vmatpush.msra.mxu0 %v439_v2  ;;  %s1052_s19 = sshra.s32 %s597_s29, 4  ;;  %s1058_s16 = scalar_lea.hbm %s1408_s6, 16  ;;  %s1053_s19 = int_to_ptr.hbm [resolvable:$true] %s1052_s19 }
  0x45   : > { %v506_v13 = vmul.f32 1000000.0, %v505_v12  ;;  %s1054_s24 = scalar_lea.hbm %s1053_s19, 8  ;;  %p1059_p10 = scmp.lt.s32.totalorder %s1053_s19, %s1408_s6 }
  0x46   : > { %465 = vmatpush.msra.mxu0 %v438_v3  ;;  %p1055_p7 = scmp.ne.s32.totalorder %s1053_s19, %s1054_s24  ;;  %p1060_p11 = scmp.lt.s32.totalorder %s1058_s16, %s1054_s24 }
  0x47   : > { %777 = vmatmul.msk.f32.vlgmr.msra.gmra.mxu0 %vm446_vm0, %v437_v4  ;;  %v508_v19 = vld [vmem:[#allocation3] sm:$0xff] }
  0x48   : > { %p1056_p8 = pnand %p1055_p7, %p1279_p0  ;;  %p1061_p12 = por %p1060_p11, %p1059_p10 }
  0x49   : > { %v525_v31 = vld [vmem:[#allocation4] sm:$0xff] }
  0x4a   : > { %v533_v37 = vld [vmem:[#allocation5] sm:$0xff]  ;;  %p1057_p9 = pneg %p1056_p8 }
  0x4c   : > { %p1062_p13 = pnand %p1061_p12, %p1057_p9 }
  0xc4   : > { %v467_v7 = vpop.f32.mrf.mxu0 }
  0xc5   : > { %v468_v8 = vadd.f32 %v881_v6, %v467_v7 }
  0xc7   : > { %470 = vst.msk [vmem:[#allocation2] sm:$0xff] %vm446_vm0, %v468_v8 }
  0xce   : > { %v475_v9 = vld [vmem:[#allocation2] sm:$0xff] }
  0xcf   : > { %779 = vmatmul.msk.f32.vlgmr.msra.gmra.mxu1 %vm446_vm0, %v475_v9 }
 0x14c   : > { %v501_v14 = vpop.f32.mrf.mxu1 }
 0x14d   : > { %v507_v15 = vsub.f32 %v501_v14, %v506_v13 }
 0x14f   : > { %v510_v16 = vsel %vm509_vm2, %v507_v15, -inf }
 0x150   : > { %511 = vmax.xlane.f32.xlu0 %v510_v16 }
 0x1c3   : > { %v512_v20 = vpop.xlane.xlu0 %511 }
 0x1c4   : > { %v513_v21 = vmax.f32 %v508_v19, %v512_v20 }
 0x1c6   : > { %v514_v22 = vsub.f32 %v508_v19, %v513_v21  ;;  %566 = vst.msk [vmem:[#allocation3] sm:$0xff] %vm471_vm1, %v513_v21  ;;  %519 = vperm.xlu0 %878, %v513_v21  }
 0x1c8   : > { %v515_v29 = vmul.f32 1.442695, %v514_v22 }
 0x238   : > { %v520_v24 = vpop.permute.xlu0 %519 }
 0x239   : > { %v522_v25 = vsub.f32 %v507_v15, %v520_v24 }
 0x23b   : > { %v523_v26 = vmul.f32 1.442695, %v522_v25 }
 0x23d   : > { %882 = vpow2.f32 %v523_v26 }
 0x23e   : > { %884 = vpow2.f32 %v515_v29 }
 0x243   : > { %v883_v27 = vpop.eup %882 }
 0x244   : > { %780 = vmatmul.msk.f32.vlgmr.msra.gmra.mxu2 %vm509_vm2, %v883_v27  ;;  %v527_v28 = vsel %vm509_vm2, %v883_v27, 0.0  ;;  %v885_v30 = vpop.eup %884 }
 0x245   : > { %528 = vadd.xlane.f32.xlu1 %v527_v28  ;;  %v526_v32 = vmul.f32 %v885_v30, %v525_v31 }
 0x25e   : > { %536 = vperm.xlu1 %879, %v885_v30  }
 0x2b8   : > { %v529_v33 = vpop.xlane.xlu1 %528 }
 0x2b9   : > { %v530_v34 = vadd.f32 %v529_v33, %v526_v32 }
 0x2bb   : > { %532 = vst.msk [vmem:[#allocation4] sm:$0xff] %vm471_vm1, %v530_v34 }
 0x2c2   : > { %v571_v35 = vld [vmem:[#allocation4] sm:$0xff] }
 0x2c3   : > { %886 = vrcp.f32 %v571_v35 }
 0x2c7   : > { %v561_v40 = vpop.f32.mrf.mxu2 }
 0x2c9   : > { %v887_v36 = vpop.eup %886 }
 0x2ca   : > { %575 = vperm.xlu2 %880, %v887_v36  }
 0x2d0   : > { %v537_v38 = vpop.permute.xlu1 %536 }
 0x2d1   : > { %v539_v39 = vmul.f32 %v537_v38, %v533_v37 }
 0x2d3   : > { %v564_v41 = vadd.f32 %v561_v40, %v539_v39 }
 0x2d5   : > { %565 = vst.msk [vmem:[#allocation5] sm:$0xff] %vm446_vm0, %v564_v41 }
 0x2dc   : > { %v570_v42 = vld [vmem:[#allocation5] sm:$0xff] }
 0x324   : > { %v576_v43 = vpop.permute.xlu2 %575 }
 0x325   : > { %v578_v44 = vmul.f32 %v576_v43, %v570_v42 }
 0x327   : > { %579 = vst.msk [vmem:[%s432_s17] sm:$0xff] %vm446_vm0, %v578_v44 }
 0x328   : > { %1065 = shalt.err (!%p1062_p13)
}
 0x329   : > { %797 = dma.vmem_to_hbm [thread:$0]  (%p1279_p0), %s595_s28, 128, %s597_s29, %s581_s12  }
 0x32a PF: > { %s1434_s25 = sld [smem:[#allocation23_spill]]  ;;  %s608_s26 = sand.u32 1, %s1112_s21  }
 0x32b   : > { %p817_p4 = pnand %p761_p3, %p1283_p2  ;;  %s609_s23 = scalar_lea.sflag [#allocation8], %s608_s26 }
 0x32d   : > { %p818_p5 = pneg %p817_p4 }
 0x32f   : > { %1107 = dma.done.wait (%p818_p5), %s609_s23, 128  }
 0x330   : > { %1109 = vsyncadd (%p818_p5), %s609_s23, 4294967168  ;;  %s26_s26 = sadd.s32 1, %s1434_s25   ;;  %s1435_s27 = sld [smem:[#allocation21_spill]] }
 0x331   : > { %p23_p1 = scmp.ge.s32.totalorder %s26_s26, 4   ;;  %s1436_s23 = sld [smem:[#allocation25_spill]] }
 0x332   : > { %s1437_s24 = sld [smem:[#allocation22_spill]]  ;;  %s1439_s21 = smov %s1116_s22 }
 0x333   : > { %s1438_s25 = sld [smem:[#allocation24_spill]]  ;;  %25 = sbr.rel (!%p23_p1) target bundleno = 13 (0xd), region = 136 }
 0x336   : > { %s1440_s22 = smov %s1435_s27 }
 0x338   :  { %615 = vsyncpa [#allocation7], 1 }
 0x339   :  { %617 = vsyncpa [#allocation7 + $0x1], 1 }
 0x33a   :  { %618 = vsyncpa [#allocation10], 1 }
 0x33b   :  { %620 = vsyncpa [#allocation10 + $0x1], 1 }
 0x33c   :  { %621 = vsyncpa [#allocation13], 1 }
 0x33d   :  { %622 = vsyncpa [#allocation8], 1 }
 0x33e   :  { %624 = vsyncpa [#allocation8 + $0x1], 1 }

</bundles_post_ra>
